<compile_context>
chip_gen: v7x
topology: tpu7x:2x2x1
jax: 0.10.0
libtpu: 0.0.40
codegen_flags: <defaults>
</compile_context>

<pallas_src>
import math

import jax
import jax.numpy as jnp
from jax.experimental import pallas as pl
from jax.experimental.pallas import tpu as pltpu


# ----------------------------- in-kernel helpers -----------------------------

def _layer_norm(y, eps=1e-5):
    # nn.LayerNorm(entity_dim, elementwise_affine=False): biased variance, eps=1e-5.
    mean = jnp.mean(y, axis=-1, keepdims=True)
    var = jnp.mean((y - mean) ** 2, axis=-1, keepdims=True)
    return (y - mean) * jax.lax.rsqrt(var + eps)


# ------------------------------- Pallas kernels -------------------------------

def _godel_kernel(x_ref, o_ref):
    # logic == 'godel': elementwise min over the sets axis; no norm / regularizer.
    o_ref[...] = jnp.min(x_ref[...], axis=0).astype(o_ref.dtype)


def _luka_kernel(x_ref, o_ref):
    # logic == 'luka': sum over sets - (S - 1), then LayerNorm (no affine).
    x = x_ref[...].astype(jnp.float32)                      # (S, TB, D)
    y = jnp.sum(x, axis=0) - jnp.float32(x.shape[0] - 1)
    o_ref[...] = _layer_norm(y).astype(o_ref.dtype)


def _product_kernel(x_ref, o_ref):
    # logic == 'product', no attention: elementwise product over sets, then LayerNorm.
    x = x_ref[...].astype(jnp.float32)                      # (S, TB, D)
    o_ref[...] = _layer_norm(jnp.prod(x, axis=0)).astype(o_ref.dtype)


def _product_attn_kernel(x_ref, w1_ref, b1_ref, w2_ref, o_ref):
    # logic == 'product', use_attention=True:
    #   attn = softmax_over_sets( (relu(x @ W1^T + b1) @ W2^T + b2) / sqrt(D) )
    #   y    = exp( sum_over_sets( log(x + 1e-7) * attn ) );  out = LayerNorm(y)
    # The 1/sqrt(D) scale is pre-folded into w2_ref by the wrapper; b2 is dropped because
    # softmax over the sets axis is shift-invariant (adding b2/sqrt(D) to every logit is a
    # no-op on attn).
    x = x_ref[...]                                          # (S, TB, D)
    s, tb, d = x.shape
    xf = x.astype(jnp.float32)

    # Linear1 on the MXU in bf16 (f32 accumulation).  TB is a multiple of 8 (16 for bf16)
    # whenever the batch is tiled, so this flatten is layout-preserving.
    flat = x.reshape(s * tb, d).astype(jnp.bfloat16)
    h = jnp.dot(flat, w1_ref[...], preferred_element_type=jnp.float32) + b1_ref[...]
    h = jnp.maximum(h, 0.0)                                 # relu, (S*TB, D) f32

    # Linear2 has out_features == 1: an N=1 matmul wastes the MXU, so use a VPU multiply +
    # cross-lane reduce.  keepdims keeps logits as (S, TB, 1): the softmax and the broadcast
    # back over D are then lane-broadcasts, no sublane<->lane relayout round-trips.
    h3 = h.reshape(s, tb, d)
    logits = jnp.sum(h3 * w2_ref[...], axis=-1, keepdims=True)       # (S, TB, 1)

    # softmax over the sets axis (dim 0)
    m = jnp.max(logits, axis=0, keepdims=True)
    e = jnp.exp(logits - m)
    attn = e / jnp.sum(e, axis=0, keepdims=True)            # (S, TB, 1)

    # NOTE: log() assumes embeddings > -1e-7, same assumption as the PyTorch module.
    logx = jnp.log(xf + 1e-7)
    y = jnp.exp(jnp.sum(logx * attn, axis=0))               # (TB, D)
    o_ref[...] = _layer_norm(y).astype(o_ref.dtype)


# --------------------------------- wrapper ------------------------------------

def _tpu_budgets():
    """(per-step tile byte budget, scoped-VMEM limit) sized per TPU generation."""
    try:
        vmem = int(pltpu.get_tpu_info().vmem_capacity_bytes)
    except Exception:
        vmem = 128 * 1024 * 1024                   # conservative fallback (v5e/v6e class)
    tile_budget = vmem // 4                        # ~16 MiB on v7x, ~32 MiB on v5e/v6e
    # Leave headroom below physical VMEM: 48 MiB on v7x (64 MiB), 64 MiB on v5e/v6e (128 MiB).
    vmem_limit = min(max(vmem - 16 * 1024 * 1024, 32 * 1024 * 1024), 64 * 1024 * 1024)
    return tile_budget, vmem_limit


def _pick_block_b(b, s, d, attention, in_bytes, tile_budget):
    """Largest batch tile: only the pipelined input/output blocks are double-buffered; the
    f32 intermediates and the VMEM-resident weights exist as a single copy."""
    pipelined_per_row = s * d * in_bytes + d * in_bytes       # x block + out block, per row
    per_row = 2 * pipelined_per_row                           # BlockSpec double-buffering
    if attention:
        per_row += 4 * s * d * 4                              # xf / h / logx / weighted (f32)
        fixed = d * d * 2 + 4 * d * 4                         # bf16 W1 + small weight vectors
    else:
        per_row += s * d * 4                                  # f32 upcast inside the kernel
        fixed = 0
    align = 16 if in_bytes <= 2 else 8                        # bf16 packs 16 rows / sublane tile
    tb = max(tile_budget - fixed, per_row) // per_row
    tb = min(2048, max(align, (tb // align) * align))
    return tb


def init_conjunction_params(entity_dim, key):
    """Torch-equivalent init: xavier_uniform weights, default nn.Linear biases."""
    k1, k2, k3, k4 = jax.random.split(key, 4)
    d = entity_dim
    bound1 = math.sqrt(6.0 / (d + d))
    w1 = jax.random.uniform(k1, (d, d), jnp.float32, -bound1, bound1)   # torch (out, in)
    bnd_b = 1.0 / math.sqrt(d)
    b1 = jax.random.uniform(k2, (d,), jnp.float32, -bnd_b, bnd_b)
    bound2 = math.sqrt(6.0 / (d + 1))
    w2 = jax.random.uniform(k3, (1, d), jnp.float32, -bound2, bound2)   # torch (out, in)
    b2 = jax.random.uniform(k4, (1,), jnp.float32, -bnd_b, bnd_b)
    return {"w1": w1, "b1": b1, "w2": w2, "b2": b2}


def prepare_attention_params(params):
    """One-time prep: transpose w1 + cast bf16 (MXU-native), fold 1/sqrt(D) into w2.
    b2 is dropped: it cancels under the softmax over the sets axis."""
    d = params["w1"].shape[0]
    inv_sqrt_d = jnp.float32(1.0 / math.sqrt(d))
    return {
        "w1_t": params["w1"].T.astype(jnp.bfloat16),                     # (D, D) = (in, out)
        "b1": params["b1"].reshape(1, d).astype(jnp.float32),            # (1, D)
        "w2_scaled": (params["w2"] * inv_sqrt_d).astype(jnp.float32),    # (1, D)
    }


def conjunction_forward(embeddings, logic_type="product", use_attention=False,
                        params=None, block_b=None):
    """Pallas implementation of Conjunction.forward.

    embeddings: (S, B, D), f32 or bf16.  Returns (B, D) in the input dtype.
    For the product+attention path, `params` must come from prepare_attention_params().
    """
    s, b, d = embeddings.shape
    attention = (logic_type == "product") and use_attention
    in_bytes = jnp.dtype(embeddings.dtype).itemsize
    align = 16 if in_bytes <= 2 else 8
    tile_budget, vmem_limit = _tpu_budgets()

    if block_b is not None:
        tb = min(block_b, b)
        if tb < b and tb % align != 0:             # blocked batch dim must be tile-aligned
            tb = max(align, (tb // align) * align)
    else:
        tb = min(_pick_block_b(b, s, d, attention, in_bytes, tile_budget), b)
        if b > align:
            # Keep the 1-D batch grid at >= 2 steps with an even count so v7x's two
            # TensorCores both get work (and stay balanced) under "parallel" semantics.
            # On 1-TC chips (v5e/v6e) the extra step is negligible next to the DMA time.
            steps = -(-b // tb)
            if steps < 2 or steps % 2:
                steps = max(2, steps + (steps & 1))
                tb = -(-b // steps)
                tb = max(align, ((tb + align - 1) // align) * align)

    grid = (pl.cdiv(b, tb),)
    x_spec = pl.BlockSpec((s, tb, d), lambda i: (0, i, 0))
    out_spec = pl.BlockSpec((tb, d), lambda i: (i, 0))
    out_shape = jax.ShapeDtypeStruct((b, d), embeddings.dtype)
    compiler_params = pltpu.CompilerParams(
        dimension_semantics=("parallel",),         # batch tiles are independent
        vmem_limit_bytes=vmem_limit,
    )

    if logic_type == "godel":
        # TODO(synk): 'godel_gumbel' is dead code in the reference forward(); not implemented.
        return pl.pallas_call(
            _godel_kernel, out_shape=out_shape, grid=grid,
            in_specs=[x_spec], out_specs=out_spec,
            compiler_params=compiler_params,
        )(embeddings)

    if logic_type == "luka":
        out = pl.pallas_call(
            _luka_kernel, out_shape=out_shape, grid=grid,
            in_specs=[x_spec], out_specs=out_spec,
            compiler_params=compiler_params,
        )(embeddings)
    elif logic_type == "product" and not use_attention:
        out = pl.pallas_call(
            _product_kernel, out_shape=out_shape, grid=grid,
            in_specs=[x_spec], out_specs=out_spec,
            compiler_params=compiler_params,
        )(embeddings)
    elif attention:
        assert params is not None, "product+attention needs prepare_attention_params() output"
        # Constant block indices -> weights DMA'd once, VMEM-resident across batch tiles.
        w_specs = [
            pl.BlockSpec((d, d), lambda i: (0, 0)),   # w1 (in, out), bf16
            pl.BlockSpec((1, d), lambda i: (0, 0)),   # b1
            pl.BlockSpec((1, d), lambda i: (0, 0)),   # w2 / sqrt(D)
        ]
        out = pl.pallas_call(
            _product_attn_kernel, out_shape=out_shape, grid=grid,
            in_specs=[x_spec] + w_specs, out_specs=out_spec,
            compiler_params=compiler_params,
        )(embeddings, params["w1_t"], params["b1"], params["w2_scaled"])
    else:
        raise ValueError(f"unknown logic_type {logic_type!r}")

    # TODO(synk): get_regularizer() is defined outside this module; applied here as identity.
    return out


# ------------------------------ pure-JAX references ----------------------------

def _ref_godel(x):
    return jnp.min(x, axis=0)


def _ref_luka(x):
    return _layer_norm(jnp.sum(x, axis=0) - (x.shape[0] - 1))


def _ref_product(x):
    return _layer_norm(jnp.prod(x, axis=0))


def _ref_product_attn(x, raw_params):
    d = x.shape[-1]
    # Mirrors the kernel's bf16 Linear1 (f32 accumulation); keeps b2 (module-faithful, it
    # cancels under the softmax so the kernel dropping it is exact).
    h = jax.nn.relu(
        jnp.dot(x.astype(jnp.bfloat16), raw_params["w1"].T.astype(jnp.bfloat16),
                preferred_element_type=jnp.float32) + raw_params["b1"])
    logits = (h @ raw_params["w2"].T + raw_params["b2"]) / jnp.sqrt(jnp.float32(d))
    attn = jax.nn.softmax(logits, axis=0)
    y = jnp.exp(jnp.sum(jnp.log(x + 1e-7) * attn, axis=0))
    return _layer_norm(y)


if __name__ == "__main__":
    S, B, D = 3, 64, 128          # num_sets, batch, entity_dim (D multiple of 128 -> lane-dense)
    TB = 16                       # exercise a 4-step batch grid explicitly
    key = jax.random.PRNGKey(0)
    k_x, k_p = jax.random.split(key)

    # product-logic inputs are probability-like (positive), matching the log() usage.
    x = jax.random.uniform(k_x, (S, B, D), jnp.float32, 0.05, 0.95)
    raw = init_conjunction_params(D, k_p)
    prepared = prepare_attention_params(raw)

    out_godel = jax.block_until_ready(conjunction_forward(x, "godel", block_b=TB))
    out_luka = jax.block_until_ready(conjunction_forward(x, "luka", block_b=TB))
    out_prod = jax.block_until_ready(conjunction_forward(x, "product", block_b=TB))
    out_attn = jax.block_until_ready(
        conjunction_forward(x, "product", use_attention=True, params=prepared, block_b=TB))
    out_attn_auto = jax.block_until_ready(
        conjunction_forward(x, "product", use_attention=True, params=prepared))   # auto tile
    out_prod_auto = jax.block_until_ready(conjunction_forward(x, "product"))      # auto tile

    assert out_godel.shape == (B, D) and out_attn.shape == (B, D)

    # correctness vs pure-JAX references
    assert jnp.allclose(out_godel, _ref_godel(x), atol=1e-6)
    assert jnp.allclose(out_luka, _ref_luka(x), rtol=1e-4, atol=1e-5)
    assert jnp.allclose(out_prod, _ref_product(x), rtol=1e-4, atol=1e-5)
    assert jnp.allclose(out_prod_auto, _ref_product(x), rtol=1e-4, atol=1e-5)
    assert jnp.allclose(out_attn, _ref_product_attn(x, raw), rtol=2e-3, atol=2e-3), \
        "attention path mismatch vs reference"
    assert jnp.allclose(out_attn_auto, out_attn, rtol=1e-4, atol=1e-5)

    print("KERNEL_OK")
</pallas_src>

<mosaic_0001>
module attributes {stable_mosaic.version = 11 : i64} {
  func.func @_godel_kernel(%arg0: i32, %arg1: memref<3x16x128xf32, #tpu.memory_space<vmem>>, %arg2: memref<16x128xf32, #tpu.memory_space<vmem>>) attributes {dimension_semantics = [#tpu.dimension_semantics<parallel>], iteration_bounds = array<i64: 4>, scalar_prefetch = 0 : i64, scratch_operands = 0 : i64, tpu.core_type = #tpu.core_type<tc>, window_params = [{transform_indices = @transform_0, window_bounds = array<i64: 3, 16, 128>}, {transform_indices = @transform_1, window_bounds = array<i64: 16, 128>}]} {
    %c0 = arith.constant 0 : index
    %c0_0 = arith.constant 0 : index
    %c0_1 = arith.constant 0 : index
    %0 = vector.load %arg1[%c0, %c0_0, %c0_1] : memref<3x16x128xf32, #tpu.memory_space<vmem>>, vector<3x16x128xf32>
    %cst = arith.constant dense<0x7F800000> : vector<16x128xf32>
    %1 = vector.multi_reduction <minimumf>, %0, %cst [0] : vector<3x16x128xf32> to vector<16x128xf32>
    %c0_2 = arith.constant 0 : index
    %c0_3 = arith.constant 0 : index
    %2 = vector.load %arg2[%c0_2, %c0_3] : memref<16x128xf32, #tpu.memory_space<vmem>>, vector<16x128xf32>
    tpu.vector_store %arg2[%c0_2, %c0_3], %1 {strides = array<i32>} : memref<16x128xf32, #tpu.memory_space<vmem>>, vector<16x128xf32>,
    return
  }
  func.func @transform_0(%arg0: i32) -> (i32, i32, i32) {
    %c0_i32 = arith.constant 0 : i32
    %c0_i32_0 = arith.constant 0 : i32
    %c0_i32_1 = arith.constant 0 : i32
    return %c0_i32, %arg0, %c0_i32_0 : i32, i32, i32
  }
  func.func @transform_1(%arg0: i32) -> (i32, i32) {
    %c0_i32 = arith.constant 0 : i32
    %c0_i32_0 = arith.constant 0 : i32
    return %arg0, %c0_i32 : i32, i32
  }
}

</mosaic_0001>

<bundles_post_ra>
// kernel: tpu_custom_call.1
= control target key start
LH: loop header
LB: loop body
LE: loop exit
PB: predicated region body
PF: predicated region fallthrough
CT: control target
= control target key end

     0   :  { %6 = vsyncpa [#allocation3], 0  ;;  %s561_s0 = inlined_call_operand.hbm [shape: f32[3,64,128], index: 0, kind: input, shape index: {}]   ;;  %s562_s1 = inlined_call_operand.hbm [shape: f32[64,128], index: 1, kind: output, shape index: {}]  }
   0x1   :  { %8 = vsyncpa [#allocation3 + $0x1], 0 }
   0x2   :  { %9 = vsyncpa [#allocation4], 0 }
   0x3   :  { %11 = vsyncpa [#allocation4 + $0x1], 0  ;;  %s422_s6 = smov 0   ;;  %s424_s7 = smov 0  }
   0x4   :  { %s426_s8 = smov 0   ;;  %s428_s9 = smov 0  }
   0x5 LB: > { %s443_s10 = sadd.s32 4294967295, %s401_s9   ;;  %s261_s11 = sadd.s32 4294967294, %s401_s9   ;;  %s401_s9 = sphi %s428_s9, %s570_s9   ;;  %s397_s8 = sphi %s426_s8, %s569_s8   ;;  %s393_s7 = sphi %s424_s7, %s568_s7   ;;  %s389_s6 = sphi %s422_s6, %s567_s6  }
   0x6   : > { %s447_s12 = sadd.s32 1, %s401_s9   ;;  %s24_s13 = sadd.s32 1, %s397_s8 }
   0x7   : > { %s21_s14 = ssub.s32 %s401_s9, %s447_s12  ;;  %p31_p0 = scmp.ne.s32.totalorder %s397_s8, %s393_s7 }
   0x8   : > { %p22_p1 = scmp.eq.s32.totalorder %s21_s14, 0  ;;  %p32_p2 = scmp.eq.s32.totalorder %s401_s9, 0 }
   0x9   : > { %p37_p3 = scmp.ne.s32.totalorder %s393_s7, %s389_s6  ;;  %p38_p4 = scmp.eq.s32.totalorder %s443_s10, 0 }
   0xa   : > { %s459_s15 = scalar_select %p22_p1, %s397_s8, %s24_s13  }
   0xb   : > { %p461_p5 = por %p32_p2, %p31_p0  ;;  %p465_p6 = por %p38_p4, %p37_p3 }
   0xc   : > { %p61_p7 = scmp.eq.s32.totalorder %s443_s10, 3  ;;  %p67_p8 = scmp.eq.s32.totalorder %s261_s11, 3 }
   0xd   : > { %p263_p11 = scmp.ge.s32.totalorder %s401_s9, 4 }
   0xe   : > { %p470_p9 = por %p61_p7, %p31_p0  ;;  %p474_p10 = por %p67_p8, %p37_p3 }
   0xf   : > { %83 = sbr.rel (%p263_p11) target bundleno = 36 (0x24), region = 16 }
  0x16   : > { %s87_s20 = sand.u32 1, %s397_s8   ;;  %s275_s22 = sshll.u32 %s401_s9, 8 }
  0x17   : > { %s277_s21 = smul.u32 48, %s87_s20  ;;  %s403_s23 = smov 1024  }
  0x18   : > { %280 = sst [smem:[#allocation7]] (%p461_p5), %s403_s23  ;;  %s97_s27 = scalar_lea.hbm %s561_s0, %s275_s22 }
  0x19   : > { %s279_s24 = scalar_select %p461_p5, [#allocation0], [#allocation8] }
  0x1a   : > { %s91_s29 = scalar_lea.vmem [#allocation2], %s277_s21  ;;  %s404_s2 = smov 256  }
  0x1b   : > { %s102_s28 = sld [smem:[%s279_s24]]   ;;  %s110_s30 = sshll.u32 %s91_s29, 4  ;;  %s111_s30 = int_to_ptr.vmem [resolvable:$true] %s110_s30 }
  0x1c   : > { %281 = sst [smem:[#allocation7 + $0x1]] (%p461_p5), %s404_s2  ;;  %s405_s3 = smov 2  }
  0x1d   : > { %282 = sst [smem:[#allocation7 + $0x2]] (%p461_p5), %s405_s3  ;;  %s406_s4 = smov 128  }
  0x1e   : > { %283 = sst [smem:[#allocation7 + $0x3]] (%p461_p5), %s406_s4  ;;  %s407_s5 = smov 8  }
  0x1f   : > { %284 = sst [smem:[#allocation7 + $0x4]] (%p461_p5), %s406_s4  ;;  %s88_s14 = scalar_lea.sflag [#allocation3], %s87_s20 }
  0x20   : > { %285 = sst [smem:[#allocation7 + $0x5]] (%p461_p5), %s407_s5  ;;  %s408_s21 = smov [#allocation6]  }
  0x21   : > { %s266_s11 = sshll.u32 %s102_s28, 26 }
  0x22   : > { %s267_s13 = sadd.s32 134217728, %s266_s11 }
  0x23   : > { %286 = dma.general (%p461_p5), %s97_s27, 768, %s111_s30, %s88_s14, %s408_s21, [#allocation7], %s267_s13, 0  }
  0x24 PF: > { %p268_p12 = scmp.ge.s32.totalorder %s401_s9, 1  ;;  %p131_p13 = scmp.lt.s32.totalorder %s401_s9, 5 }
  0x26   : > { %p132_p0 = pnand %p268_p12, %p131_p13 }
  0x27   : > { %s503_s22 = sand.u32 (!%p132_p0), 1, %s393_s7  }
  0x28   : > { %135 = sbr.rel (%p132_p0) target bundleno = 74 (0x4a), region = 24  ;;  %s138_s24 = scalar_lea.sflag (!%p132_p0), [#allocation3], %s503_s22 }
  0x29   : > { %s278_s23 = smul.u32 (!%p132_p0), 48, %s503_s22 }
  0x2b   : > { %s141_s25 = scalar_lea.vmem (!%p132_p0), [#allocation2], %s278_s23 }
  0x2f   : > { %380 = dma.done.wait (%p465_p6), %s138_s24, 768  }
  0x30   : > { %382 = vsyncadd (%p465_p6), %s138_s24, 4294966528  ;;  %s269_s16 = sshll.u32 %s503_s22, 4  ;;  %v162_v0 = vld [vmem:[%s141_s25] sm:$0xff]  ;;  %v164_v1 = vld [vmem:[%s141_s25 + $0x10] sm:$0xff]  ;;  %s276_s27 = sshll.u32 %s443_s10, 8 }
  0x31   : > { %v166_v2 = vld [vmem:[%s141_s25 + $0x20] sm:$0xff]  ;;  %s159_s20 = scalar_lea.vmem [#allocation5], %s269_s16  ;;  %v163_v4 = vld [vmem:[%s141_s25 + $0x8] sm:$0xff]  ;;  %v165_v5 = vld [vmem:[%s141_s25 + $0x18] sm:$0xff]  ;;  %s518_s29 = scalar_lea.hbm %s562_s1, %s276_s27 }
  0x32   : > { %s188_s26 = sshll.u32 %s159_s20, 4  ;;  %v168_v3 = vmin.f32 %v162_v0, %v166_v2  ;;  %v167_v6 = vld [vmem:[%s141_s25 + $0x28] sm:$0xff]  ;;  %s175_s10 = scalar_lea.sflag [#allocation4], %s503_s22  ;;  %s513_s26 = int_to_ptr.vmem [resolvable:$true] %s188_s26 }
  0x33   : > { %v170_v7 = vmin.f32 %v163_v4, %v167_v6  ;;  %s335_s30 = scalar_lea.vmem %s513_s26, 256  ;;  %s409_s2 = smov [#allocation5]  }
  0x34   : > { %v169_v8 = vmin.f32 %v168_v3, %v164_v1  ;;  %p336_p1 = scmp.ne.s32.totalorder %s513_s26, %s335_s30  ;;  %s339_s3 = sshll.u32 %s409_s2, 4  ;;  %s340_s3 = int_to_ptr.vmem [resolvable:$false] %s339_s3 }
  0x35   : > { %v171_v9 = vmin.f32 %v170_v7, %v165_v5  ;;  %s341_s4 = scalar_lea.vmem %s340_s3, 512  ;;  %p342_p4 = scmp.lt.s32.totalorder %s513_s26, %s340_s3 }
  0x36   : > { %172 = vst [vmem:[%s159_s20] sm:$0xff] %v169_v8  ;;  %p337_p2 = pnand %p336_p1, %p470_p9  ;;  %p343_p5 = scmp.lt.s32.totalorder %s341_s4, %s335_s30 }
  0x37   : > { %173 = vst [vmem:[%s159_s20 + $0x8] sm:$0xff] %v171_v9 }
  0x38   : > { %p338_p3 = pneg %p337_p2  ;;  %p344_p6 = por %p343_p5, %p342_p4 }
  0x3a   : > { %p345_p7 = pnand %p344_p6, %p338_p3 }
  0x3c   : > { %348 = shalt.err (!%p345_p7)
}
  0x3d   : > { %s349_s5 = scalar_lea.hbm %s518_s29, 256  ;;  %s353_s14 = scalar_lea.hbm %s562_s1, 1024 }
  0x3e   : > { %p350_p8 = scmp.ne.s32.totalorder %s518_s29, %s349_s5  ;;  %p354_p13 = scmp.lt.u32.totalorder %s518_s29, %s562_s1 }
  0x3f   : > { %p355_p0 = scmp.lt.u32.totalorder %s353_s14, %s349_s5  ;;  %p357_p2 = scmp.lt.u32.totalorder %s349_s5, %s518_s29 }
  0x40   : > { %p351_p11 = pnand %p350_p8, %p470_p9 }
  0x41   : > { %p356_p1 = por %p355_p0, %p354_p13 }
  0x42   : > { %p352_p12 = pneg %p351_p11 }
  0x43   : > { %p358_p3 = por %p357_p2, %p356_p1 }
  0x45   : > { %p359_p4 = pnand %p358_p3, %p352_p12 }
  0x47   : > { %362 = shalt.err (!%p359_p4)
}
  0x48   : > { %s410_s24 = smov 128   ;;  %s411_s25 = smov 8  }
  0x49   : > { %288 = dma.vmem_to_hbm [thread:$0]  (%p470_p9), %s513_s26, 256, %s518_s29, %s175_s10, %s410_s24, %s410_s24, %s411_s25  }
  0x4a PF: > { %p294_p5 = scmp.ge.s32.totalorder %s401_s9, 2  ;;  %s203_s16 = sand.u32 1, %s389_s6  }
  0x4b   : > { %s204_s20 = scalar_lea.sflag [#allocation4], %s203_s16 }
  0x4c   : > { %p291_p6 = pnand %p294_p5, %p474_p10 }
  0x4e   : > { %384 = dma.done.wait (!%p291_p6), %s204_s20, 256  }
  0x4f   : > { %386 = vsyncadd (!%p291_p6), %s204_s20, 4294967040  ;;  %p14_p7 = scmp.ge.s32.totalorder %s447_s12, 6   ;;  %s567_s6 = smov %s393_s7 }
  0x50   : > { %s568_s7 = smov %s397_s8  ;;  %s569_s8 = smov %s459_s15 }
  0x51   : > { %s570_s9 = smov %s447_s12  ;;  %16 = sbr.rel (!%p14_p7) target bundleno = 5 (0x5), region = 74 }
  0x58   :  { %209 = vsyncpa [#allocation3], 1 }
  0x59   :  { %211 = vsyncpa [#allocation3 + $0x1], 1 }
  0x5a   :  { %212 = vsyncpa [#allocation4], 1 }
  0x5b   :  { %214 = vsyncpa [#allocation4 + $0x1], 1 }

</bundles_post_ra>
